<compile_context>
chip_gen: v5e
topology: v5e:2x2
jax: 0.10.0
libtpu: 0.0.40
codegen_flags: <defaults>
</compile_context>

<pallas_src>
import jax
import jax.numpy as jnp
from jax import lax
from jax.experimental import pallas as pl
from jax.experimental.pallas import tpu as pltpu

LN_EPS = 1e-5


def conv_ln_kernel(x_ref, w_ref, g_ref, b_ref, o_ref):
    # x_ref: (N, Cin, H, W)       VMEM
    # w_ref: (Cout*Cin,)          SMEM (flat scalar table for splat-FMAs)
    # g_ref, b_ref: (1, W)        VMEM
    # o_ref: (N, Cout, H, W)      VMEM
    n, cin, h, w = x_ref.shape
    cout = o_ref.shape[1]

    x = x_ref[...].astype(jnp.float32)        # single load, (N, Cin, H, W)
    g = g_ref[...].astype(jnp.float32)        # (1, W) broadcasts over (N,Cout,H,W)
    b = b_ref[...].astype(jnp.float32)

    # 1x1 conv: Cout*Cin scalar-splat FMAs on the VPU (no MXU push/pop latency
    # for a 5x5 contraction).  Static Python unroll; Cout = Cin = 5.
    chans = []
    for o in range(cout):
        acc = w_ref[o * cin + 0] * x[:, 0, :, :]          # (N, H, W)
        for c in range(1, cin):
            acc = acc + w_ref[o * cin + c] * x[:, c, :, :]
        chans.append(acc[:, None, :, :])                  # (N, 1, H, W)
    y = jnp.concatenate(chans, axis=1)                    # (N, Cout, H, W)

    # LayerNorm over last (W) axis, fused across all channels:
    # one-pass mean / E[x^2] (independent XLU reductions), single rsqrt,
    # single affine, single full-ref store.
    mean = jnp.mean(y, axis=-1, keepdims=True)            # (N, Cout, H, 1)
    mean_sq = jnp.mean(y * y, axis=-1, keepdims=True)     # (N, Cout, H, 1)
    var = mean_sq - mean * mean                           # biased variance
    inv = lax.rsqrt(var + LN_EPS)                         # EUP
    out = (y - mean) * inv * g + b                        # (N, Cout, H, W)
    o_ref[...] = out.astype(o_ref.dtype)                  # one store


def conv_layernorm(x, conv_w_flat, gamma_2d, beta_2d):
    """x: (N, Cin, H, W) NCHW ; conv_w_flat: (Cout*Cin,) ; gamma_2d, beta_2d: (1, W)."""
    n, cin, h, w = x.shape
    cout = conv_w_flat.shape[0] // cin

    flops = 2 * n * cout * cin * h * w + 6 * n * cout * h * w   # conv FMAs + LN arith
    transcendentals = n * cout * h                              # one rsqrt per row
    bytes_accessed = (x.size + n * cout * h * w) * 4 + conv_w_flat.size * 4 + 2 * w * 4

    return pl.pallas_call(
        conv_ln_kernel,
        out_shape=jax.ShapeDtypeStruct((n, cout, h, w), x.dtype),
        in_specs=[
            pl.BlockSpec(memory_space=pltpu.MemorySpace.VMEM),   # x (full array)
            pl.BlockSpec(memory_space=pltpu.MemorySpace.SMEM),   # conv weights (flat)
            pl.BlockSpec(memory_space=pltpu.MemorySpace.VMEM),   # gamma (1, W)
            pl.BlockSpec(memory_space=pltpu.MemorySpace.VMEM),   # beta  (1, W)
        ],
        out_specs=pl.BlockSpec(memory_space=pltpu.MemorySpace.VMEM),
        cost_estimate=pl.CostEstimate(
            flops=int(flops),
            transcendentals=int(transcendentals),
            bytes_accessed=int(bytes_accessed),
        ),
    )(x, conv_w_flat, gamma_2d, beta_2d)


def _reference(x, conv_w, gamma, beta):
    # pure-JAX reference of the PyTorch forward (Conv2d 1x1 no-bias + LayerNorm(10))
    y = jnp.einsum("oc,nchw->nohw", conv_w, x)
    mean = jnp.mean(y, axis=-1, keepdims=True)
    var = jnp.mean((y - mean) ** 2, axis=-1, keepdims=True)
    return (y - mean) / jnp.sqrt(var + LN_EPS) * gamma + beta


if __name__ == "__main__":
    key = jax.random.PRNGKey(0)
    k_x, k_w = jax.random.split(key)

    N, C, H, W = 2, 5, 8, 10            # LayerNorm(10) -> last dim must be 10
    x = jax.random.normal(k_x, (N, C, H, W), dtype=jnp.float32)

    # Conv2d(5, 5, 1, bias=False): weight (C_out, C_in, 1, 1) -> stored as (C_out, C_in)
    conv_w = 0.2 * jax.random.normal(k_w, (C, C), dtype=jnp.float32)
    # LayerNorm(10) default parameters: weight=ones, bias=zeros (pre-shaped (1, W))
    gamma_2d = jnp.ones((1, W), dtype=jnp.float32)
    beta_2d = jnp.zeros((1, W), dtype=jnp.float32)

    conv_w_flat = conv_w.reshape(-1)    # (25,) flat SMEM scalar table

    out = jax.block_until_ready(conv_layernorm(x, conv_w_flat, gamma_2d, beta_2d))

    ref = _reference(x, conv_w, gamma_2d[0], beta_2d[0])
    assert out.shape == (N, C, H, W)
    assert jnp.allclose(out, ref, atol=1e-5, rtol=1e-5)

    print("KERNEL_OK")
</pallas_src>

<mosaic_0001>
module attributes {stable_mosaic.version = 11 : i64} {
  func.func @conv_ln_kernel(%arg0: memref<2x5x8x10xf32, #tpu.memory_space<vmem>>, %arg1: memref<25xf32, #tpu.memory_space<smem>>, %arg2: memref<1x10xf32, #tpu.memory_space<vmem>>, %arg3: memref<1x10xf32, #tpu.memory_space<vmem>>, %arg4: memref<2x5x8x10xf32, #tpu.memory_space<vmem>>) attributes {dimension_semantics = [], scalar_prefetch = 0 : i64, scratch_operands = 0 : i64, tpu.core_type = #tpu.core_type<tc>} {
    %c0 = arith.constant 0 : index
    %c0_0 = arith.constant 0 : index
    %c0_1 = arith.constant 0 : index
    %c0_2 = arith.constant 0 : index
    %0 = vector.load %arg0[%c0, %c0_0, %c0_1, %c0_2] : memref<2x5x8x10xf32, #tpu.memory_space<vmem>>, vector<2x5x8x10xf32>
    %c0_3 = arith.constant 0 : index
    %c0_4 = arith.constant 0 : index
    %1 = vector.load %arg2[%c0_3, %c0_4] : memref<1x10xf32, #tpu.memory_space<vmem>>, vector<1x10xf32>
    %c0_5 = arith.constant 0 : index
    %c0_6 = arith.constant 0 : index
    %2 = vector.load %arg3[%c0_5, %c0_6] : memref<1x10xf32, #tpu.memory_space<vmem>>, vector<1x10xf32>
    %c0_7 = arith.constant 0 : index
    %3 = memref.load %arg1[%c0_7] : memref<25xf32, #tpu.memory_space<smem>>
    %4 = vector.extract_strided_slice %0 {offsets = [0, 0, 0, 0], sizes = [2, 1, 8, 10], strides = [1, 1, 1, 1]} : vector<2x5x8x10xf32> to vector<2x1x8x10xf32>
    %5 = vector.shape_cast %4 : vector<2x1x8x10xf32> to vector<2x8x10xf32>
    %6 = vector.broadcast %3 : f32 to vector<2x8x10xf32>
    %7 = arith.mulf %6, %5 : vector<2x8x10xf32>
    %c1 = arith.constant 1 : index
    %8 = memref.load %arg1[%c1] : memref<25xf32, #tpu.memory_space<smem>>
    %9 = vector.extract_strided_slice %0 {offsets = [0, 1, 0, 0], sizes = [2, 1, 8, 10], strides = [1, 1, 1, 1]} : vector<2x5x8x10xf32> to vector<2x1x8x10xf32>
    %10 = vector.shape_cast %9 : vector<2x1x8x10xf32> to vector<2x8x10xf32>
    %11 = vector.broadcast %8 : f32 to vector<2x8x10xf32>
    %12 = arith.mulf %11, %10 : vector<2x8x10xf32>
    %13 = arith.addf %7, %12 : vector<2x8x10xf32>
    %c2 = arith.constant 2 : index
    %14 = memref.load %arg1[%c2] : memref<25xf32, #tpu.memory_space<smem>>
    %15 = vector.extract_strided_slice %0 {offsets = [0, 2, 0, 0], sizes = [2, 1, 8, 10], strides = [1, 1, 1, 1]} : vector<2x5x8x10xf32> to vector<2x1x8x10xf32>
    %16 = vector.shape_cast %15 : vector<2x1x8x10xf32> to vector<2x8x10xf32>
    %17 = vector.broadcast %14 : f32 to vector<2x8x10xf32>
    %18 = arith.mulf %17, %16 : vector<2x8x10xf32>
    %19 = arith.addf %13, %18 : vector<2x8x10xf32>
    %c3 = arith.constant 3 : index
    %20 = memref.load %arg1[%c3] : memref<25xf32, #tpu.memory_space<smem>>
    %21 = vector.extract_strided_slice %0 {offsets = [0, 3, 0, 0], sizes = [2, 1, 8, 10], strides = [1, 1, 1, 1]} : vector<2x5x8x10xf32> to vector<2x1x8x10xf32>
    %22 = vector.shape_cast %21 : vector<2x1x8x10xf32> to vector<2x8x10xf32>
    %23 = vector.broadcast %20 : f32 to vector<2x8x10xf32>
    %24 = arith.mulf %23, %22 : vector<2x8x10xf32>
    %25 = arith.addf %19, %24 : vector<2x8x10xf32>
    %c4 = arith.constant 4 : index
    %26 = memref.load %arg1[%c4] : memref<25xf32, #tpu.memory_space<smem>>
    %27 = vector.extract_strided_slice %0 {offsets = [0, 4, 0, 0], sizes = [2, 1, 8, 10], strides = [1, 1, 1, 1]} : vector<2x5x8x10xf32> to vector<2x1x8x10xf32>
    %28 = vector.shape_cast %27 : vector<2x1x8x10xf32> to vector<2x8x10xf32>
    %29 = vector.broadcast %26 : f32 to vector<2x8x10xf32>
    %30 = arith.mulf %29, %28 : vector<2x8x10xf32>
    %31 = arith.addf %25, %30 : vector<2x8x10xf32>
    %32 = vector.shape_cast %31 : vector<2x8x10xf32> to vector<2x1x8x10xf32>
    %c5 = arith.constant 5 : index
    %33 = memref.load %arg1[%c5] : memref<25xf32, #tpu.memory_space<smem>>
    %34 = vector.extract_strided_slice %0 {offsets = [0, 0, 0, 0], sizes = [2, 1, 8, 10], strides = [1, 1, 1, 1]} : vector<2x5x8x10xf32> to vector<2x1x8x10xf32>
    %35 = vector.shape_cast %34 : vector<2x1x8x10xf32> to vector<2x8x10xf32>
    %36 = vector.broadcast %33 : f32 to vector<2x8x10xf32>
    %37 = arith.mulf %36, %35 : vector<2x8x10xf32>
    %c6 = arith.constant 6 : index
    %38 = memref.load %arg1[%c6] : memref<25xf32, #tpu.memory_space<smem>>
    %39 = vector.extract_strided_slice %0 {offsets = [0, 1, 0, 0], sizes = [2, 1, 8, 10], strides = [1, 1, 1, 1]} : vector<2x5x8x10xf32> to vector<2x1x8x10xf32>
    %40 = vector.shape_cast %39 : vector<2x1x8x10xf32> to vector<2x8x10xf32>
    %41 = vector.broadcast %38 : f32 to vector<2x8x10xf32>
    %42 = arith.mulf %41, %40 : vector<2x8x10xf32>
    %43 = arith.addf %37, %42 : vector<2x8x10xf32>
    %c7 = arith.constant 7 : index
    %44 = memref.load %arg1[%c7] : memref<25xf32, #tpu.memory_space<smem>>
    %45 = vector.extract_strided_slice %0 {offsets = [0, 2, 0, 0], sizes = [2, 1, 8, 10], strides = [1, 1, 1, 1]} : vector<2x5x8x10xf32> to vector<2x1x8x10xf32>
    %46 = vector.shape_cast %45 : vector<2x1x8x10xf32> to vector<2x8x10xf32>
    %47 = vector.broadcast %44 : f32 to vector<2x8x10xf32>
    %48 = arith.mulf %47, %46 : vector<2x8x10xf32>
    %49 = arith.addf %43, %48 : vector<2x8x10xf32>
    %c8 = arith.constant 8 : index
    %50 = memref.load %arg1[%c8] : memref<25xf32, #tpu.memory_space<smem>>
    %51 = vector.extract_strided_slice %0 {offsets = [0, 3, 0, 0], sizes = [2, 1, 8, 10], strides = [1, 1, 1, 1]} : vector<2x5x8x10xf32> to vector<2x1x8x10xf32>
    %52 = vector.shape_cast %51 : vector<2x1x8x10xf32> to vector<2x8x10xf32>
    %53 = vector.broadcast %50 : f32 to vector<2x8x10xf32>
    %54 = arith.mulf %53, %52 : vector<2x8x10xf32>
    %55 = arith.addf %49, %54 : vector<2x8x10xf32>
    %c9 = arith.constant 9 : index
    %56 = memref.load %arg1[%c9] : memref<25xf32, #tpu.memory_space<smem>>
    %57 = vector.extract_strided_slice %0 {offsets = [0, 4, 0, 0], sizes = [2, 1, 8, 10], strides = [1, 1, 1, 1]} : vector<2x5x8x10xf32> to vector<2x1x8x10xf32>
    %58 = vector.shape_cast %57 : vector<2x1x8x10xf32> to vector<2x8x10xf32>
    %59 = vector.broadcast %56 : f32 to vector<2x8x10xf32>
    %60 = arith.mulf %59, %58 : vector<2x8x10xf32>
    %61 = arith.addf %55, %60 : vector<2x8x10xf32>
    %62 = vector.shape_cast %61 : vector<2x8x10xf32> to vector<2x1x8x10xf32>
    %c10 = arith.constant 10 : index
    %63 = memref.load %arg1[%c10] : memref<25xf32, #tpu.memory_space<smem>>
    %64 = vector.extract_strided_slice %0 {offsets = [0, 0, 0, 0], sizes = [2, 1, 8, 10], strides = [1, 1, 1, 1]} : vector<2x5x8x10xf32> to vector<2x1x8x10xf32>
    %65 = vector.shape_cast %64 : vector<2x1x8x10xf32> to vector<2x8x10xf32>
    %66 = vector.broadcast %63 : f32 to vector<2x8x10xf32>
    %67 = arith.mulf %66, %65 : vector<2x8x10xf32>
    %c11 = arith.constant 11 : index
    %68 = memref.load %arg1[%c11] : memref<25xf32, #tpu.memory_space<smem>>
    %69 = vector.extract_strided_slice %0 {offsets = [0, 1, 0, 0], sizes = [2, 1, 8, 10], strides = [1, 1, 1, 1]} : vector<2x5x8x10xf32> to vector<2x1x8x10xf32>
    %70 = vector.shape_cast %69 : vector<2x1x8x10xf32> to vector<2x8x10xf32>
    %71 = vector.broadcast %68 : f32 to vector<2x8x10xf32>
    %72 = arith.mulf %71, %70 : vector<2x8x10xf32>
    %73 = arith.addf %67, %72 : vector<2x8x10xf32>
    %c12 = arith.constant 12 : index
    %74 = memref.load %arg1[%c12] : memref<25xf32, #tpu.memory_space<smem>>
    %75 = vector.extract_strided_slice %0 {offsets = [0, 2, 0, 0], sizes = [2, 1, 8, 10], strides = [1, 1, 1, 1]} : vector<2x5x8x10xf32> to vector<2x1x8x10xf32>
    %76 = vector.shape_cast %75 : vector<2x1x8x10xf32> to vector<2x8x10xf32>
    %77 = vector.broadcast %74 : f32 to vector<2x8x10xf32>
    %78 = arith.mulf %77, %76 : vector<2x8x10xf32>
    %79 = arith.addf %73, %78 : vector<2x8x10xf32>
    %c13 = arith.constant 13 : index
    %80 = memref.load %arg1[%c13] : memref<25xf32, #tpu.memory_space<smem>>
    %81 = vector.extract_strided_slice %0 {offsets = [0, 3, 0, 0], sizes = [2, 1, 8, 10], strides = [1, 1, 1, 1]} : vector<2x5x8x10xf32> to vector<2x1x8x10xf32>
    %82 = vector.shape_cast %81 : vector<2x1x8x10xf32> to vector<2x8x10xf32>
    %83 = vector.broadcast %80 : f32 to vector<2x8x10xf32>
    %84 = arith.mulf %83, %82 : vector<2x8x10xf32>
    %85 = arith.addf %79, %84 : vector<2x8x10xf32>
    %c14 = arith.constant 14 : index
    %86 = memref.load %arg1[%c14] : memref<25xf32, #tpu.memory_space<smem>>
    %87 = vector.extract_strided_slice %0 {offsets = [0, 4, 0, 0], sizes = [2, 1, 8, 10], strides = [1, 1, 1, 1]} : vector<2x5x8x10xf32> to vector<2x1x8x10xf32>
    %88 = vector.shape_cast %87 : vector<2x1x8x10xf32> to vector<2x8x10xf32>
    %89 = vector.broadcast %86 : f32 to vector<2x8x10xf32>
    %90 = arith.mulf %89, %88 : vector<2x8x10xf32>
    %91 = arith.addf %85, %90 : vector<2x8x10xf32>
    %92 = vector.shape_cast %91 : vector<2x8x10xf32> to vector<2x1x8x10xf32>
    %c15 = arith.constant 15 : index
    %93 = memref.load %arg1[%c15] : memref<25xf32, #tpu.memory_space<smem>>
    %94 = vector.extract_strided_slice %0 {offsets = [0, 0, 0, 0], sizes = [2, 1, 8, 10], strides = [1, 1, 1, 1]} : vector<2x5x8x10xf32> to vector<2x1x8x10xf32>
    %95 = vector.shape_cast %94 : vector<2x1x8x10xf32> to vector<2x8x10xf32>
    %96 = vector.broadcast %93 : f32 to vector<2x8x10xf32>
    %97 = arith.mulf %96, %95 : vector<2x8x10xf32>
    %c16 = arith.constant 16 : index
    %98 = memref.load %arg1[%c16] : memref<25xf32, #tpu.memory_space<smem>>
    %99 = vector.extract_strided_slice %0 {offsets = [0, 1, 0, 0], sizes = [2, 1, 8, 10], strides = [1, 1, 1, 1]} : vector<2x5x8x10xf32> to vector<2x1x8x10xf32>
    %100 = vector.shape_cast %99 : vector<2x1x8x10xf32> to vector<2x8x10xf32>
    %101 = vector.broadcast %98 : f32 to vector<2x8x10xf32>
    %102 = arith.mulf %101, %100 : vector<2x8x10xf32>
    %103 = arith.addf %97, %102 : vector<2x8x10xf32>
    %c17 = arith.constant 17 : index
    %104 = memref.load %arg1[%c17] : memref<25xf32, #tpu.memory_space<smem>>
    %105 = vector.extract_strided_slice %0 {offsets = [0, 2, 0, 0], sizes = [2, 1, 8, 10], strides = [1, 1, 1, 1]} : vector<2x5x8x10xf32> to vector<2x1x8x10xf32>
    %106 = vector.shape_cast %105 : vector<2x1x8x10xf32> to vector<2x8x10xf32>
    %107 = vector.broadcast %104 : f32 to vector<2x8x10xf32>
    %108 = arith.mulf %107, %106 : vector<2x8x10xf32>
    %109 = arith.addf %103, %108 : vector<2x8x10xf32>
    %c18 = arith.constant 18 : index
    %110 = memref.load %arg1[%c18] : memref<25xf32, #tpu.memory_space<smem>>
    %111 = vector.extract_strided_slice %0 {offsets = [0, 3, 0, 0], sizes = [2, 1, 8, 10], strides = [1, 1, 1, 1]} : vector<2x5x8x10xf32> to vector<2x1x8x10xf32>
    %112 = vector.shape_cast %111 : vector<2x1x8x10xf32> to vector<2x8x10xf32>
    %113 = vector.broadcast %110 : f32 to vector<2x8x10xf32>
    %114 = arith.mulf %113, %112 : vector<2x8x10xf32>
    %115 = arith.addf %109, %114 : vector<2x8x10xf32>
    %c19 = arith.constant 19 : index
    %116 = memref.load %arg1[%c19] : memref<25xf32, #tpu.memory_space<smem>>
    %117 = vector.extract_strided_slice %0 {offsets = [0, 4, 0, 0], sizes = [2, 1, 8, 10], strides = [1, 1, 1, 1]} : vector<2x5x8x10xf32> to vector<2x1x8x10xf32>
    %118 = vector.shape_cast %117 : vector<2x1x8x10xf32> to vector<2x8x10xf32>
    %119 = vector.broadcast %116 : f32 to vector<2x8x10xf32>
    %120 = arith.mulf %119, %118 : vector<2x8x10xf32>
    %121 = arith.addf %115, %120 : vector<2x8x10xf32>
    %122 = vector.shape_cast %121 : vector<2x8x10xf32> to vector<2x1x8x10xf32>
    %c20 = arith.constant 20 : index
    %123 = memref.load %arg1[%c20] : memref<25xf32, #tpu.memory_space<smem>>
    %124 = vector.extract_strided_slice %0 {offsets = [0, 0, 0, 0], sizes = [2, 1, 8, 10], strides = [1, 1, 1, 1]} : vector<2x5x8x10xf32> to vector<2x1x8x10xf32>
    %125 = vector.shape_cast %124 : vector<2x1x8x10xf32> to vector<2x8x10xf32>
    %126 = vector.broadcast %123 : f32 to vector<2x8x10xf32>
    %127 = arith.mulf %126, %125 : vector<2x8x10xf32>
    %c21 = arith.constant 21 : index
    %128 = memref.load %arg1[%c21] : memref<25xf32, #tpu.memory_space<smem>>
    %129 = vector.extract_strided_slice %0 {offsets = [0, 1, 0, 0], sizes = [2, 1, 8, 10], strides = [1, 1, 1, 1]} : vector<2x5x8x10xf32> to vector<2x1x8x10xf32>
    %130 = vector.shape_cast %129 : vector<2x1x8x10xf32> to vector<2x8x10xf32>
    %131 = vector.broadcast %128 : f32 to vector<2x8x10xf32>
    %132 = arith.mulf %131, %130 : vector<2x8x10xf32>
    %133 = arith.addf %127, %132 : vector<2x8x10xf32>
    %c22 = arith.constant 22 : index
    %134 = memref.load %arg1[%c22] : memref<25xf32, #tpu.memory_space<smem>>
    %135 = vector.extract_strided_slice %0 {offsets = [0, 2, 0, 0], sizes = [2, 1, 8, 10], strides = [1, 1, 1, 1]} : vector<2x5x8x10xf32> to vector<2x1x8x10xf32>
    %136 = vector.shape_cast %135 : vector<2x1x8x10xf32> to vector<2x8x10xf32>
    %137 = vector.broadcast %134 : f32 to vector<2x8x10xf32>
    %138 = arith.mulf %137, %136 : vector<2x8x10xf32>
    %139 = arith.addf %133, %138 : vector<2x8x10xf32>
    %c23 = arith.constant 23 : index
    %140 = memref.load %arg1[%c23] : memref<25xf32, #tpu.memory_space<smem>>
    %141 = vector.extract_strided_slice %0 {offsets = [0, 3, 0, 0], sizes = [2, 1, 8, 10], strides = [1, 1, 1, 1]} : vector<2x5x8x10xf32> to vector<2x1x8x10xf32>
    %142 = vector.shape_cast %141 : vector<2x1x8x10xf32> to vector<2x8x10xf32>
    %143 = vector.broadcast %140 : f32 to vector<2x8x10xf32>
    %144 = arith.mulf %143, %142 : vector<2x8x10xf32>
    %145 = arith.addf %139, %144 : vector<2x8x10xf32>
    %c24 = arith.constant 24 : index
    %146 = memref.load %arg1[%c24] : memref<25xf32, #tpu.memory_space<smem>>
    %147 = vector.extract_strided_slice %0 {offsets = [0, 4, 0, 0], sizes = [2, 1, 8, 10], strides = [1, 1, 1, 1]} : vector<2x5x8x10xf32> to vector<2x1x8x10xf32>
    %148 = vector.shape_cast %147 : vector<2x1x8x10xf32> to vector<2x8x10xf32>
    %149 = vector.broadcast %146 : f32 to vector<2x8x10xf32>
    %150 = arith.mulf %149, %148 : vector<2x8x10xf32>
    %151 = arith.addf %145, %150 : vector<2x8x10xf32>
    %152 = vector.shape_cast %151 : vector<2x8x10xf32> to vector<2x1x8x10xf32>
    %153 = tpu.concatenate %32, %62, %92, %122, %152 in 1 : vector<2x1x8x10xf32>, vector<2x1x8x10xf32>, vector<2x1x8x10xf32>, vector<2x1x8x10xf32>, vector<2x1x8x10xf32> -> vector<2x5x8x10xf32>
    %cst = arith.constant dense<0.000000e+00> : vector<2x5x8xf32>
    %154 = vector.multi_reduction <add>, %153, %cst [3] : vector<2x5x8x10xf32> to vector<2x5x8xf32>
    %155 = vector.shape_cast %154 : vector<2x5x8xf32> to vector<2x5x8x1xf32>
    %cst_8 = arith.constant 1.000000e+01 : f32
    %156 = vector.broadcast %cst_8 : f32 to vector<2x5x8x1xf32>
    %157 = arith.divf %155, %156 : vector<2x5x8x1xf32>
    %158 = arith.mulf %153, %153 : vector<2x5x8x10xf32>
    %cst_9 = arith.constant dense<0.000000e+00> : vector<2x5x8xf32>
    %159 = vector.multi_reduction <add>, %158, %cst_9 [3] : vector<2x5x8x10xf32> to vector<2x5x8xf32>
    %160 = vector.shape_cast %159 : vector<2x5x8xf32> to vector<2x5x8x1xf32>
    %cst_10 = arith.constant 1.000000e+01 : f32
    %161 = vector.broadcast %cst_10 : f32 to vector<2x5x8x1xf32>
    %162 = arith.divf %160, %161 : vector<2x5x8x1xf32>
    %163 = arith.mulf %157, %157 : vector<2x5x8x1xf32>
    %164 = arith.subf %162, %163 : vector<2x5x8x1xf32>
    %cst_11 = arith.constant 9.99999974E-6 : f32
    %165 = vector.broadcast %cst_11 : f32 to vector<2x5x8x1xf32>
    %166 = arith.addf %164, %165 : vector<2x5x8x1xf32>
    %167 = math.rsqrt %166 : vector<2x5x8x1xf32>
    %168 = vector.broadcast %157 : vector<2x5x8x1xf32> to vector<2x5x8x10xf32>
    %169 = arith.subf %153, %168 : vector<2x5x8x10xf32>
    %170 = vector.broadcast %167 : vector<2x5x8x1xf32> to vector<2x5x8x10xf32>
    %171 = arith.mulf %169, %170 : vector<2x5x8x10xf32>
    %172 = vector.shape_cast %1 : vector<1x10xf32> to vector<1x1x1x10xf32>
    %173 = vector.broadcast %172 : vector<1x1x1x10xf32> to vector<2x5x8x10xf32>
    %174 = arith.mulf %171, %173 : vector<2x5x8x10xf32>
    %175 = vector.shape_cast %2 : vector<1x10xf32> to vector<1x1x1x10xf32>
    %176 = vector.broadcast %175 : vector<1x1x1x10xf32> to vector<2x5x8x10xf32>
    %177 = arith.addf %174, %176 : vector<2x5x8x10xf32>
    %c0_12 = arith.constant 0 : index
    %c0_13 = arith.constant 0 : index
    %c0_14 = arith.constant 0 : index
    %c0_15 = arith.constant 0 : index
    %178 = vector.load %arg4[%c0_12, %c0_13, %c0_14, %c0_15] : memref<2x5x8x10xf32, #tpu.memory_space<vmem>>, vector<2x5x8x10xf32>
    tpu.vector_store %arg4[%c0_12, %c0_13, %c0_14, %c0_15], %177 {strides = array<i32>} : memref<2x5x8x10xf32, #tpu.memory_space<vmem>>, vector<2x5x8x10xf32>,
    return
  }
}

</mosaic_0001>

<bundles_post_ra>
// kernel: tpu_custom_call.1
= control target key start
LH: loop header
LB: loop body
LE: loop exit
PB: predicated region body
PF: predicated region fallthrough
CT: control target
= control target key end

     0   :  { %9 = vsyncpa [#allocation3], 0  ;;  %s1099_s0 = inlined_call_operand.hbm [shape: f32[2,5,8,10], index: 0, kind: input, shape index: {}]   ;;  %s1100_s1 = inlined_call_operand.hbm [shape: f32[25], index: 1, kind: input, shape index: {}]   ;;  %s1101_s2 = inlined_call_operand.vmem [shape: f32[1,10], index: 2, kind: input, shape index: {}]   ;;  %s1102_s3 = inlined_call_operand.vmem [shape: f32[1,10], index: 3, kind: input, shape index: {}]   ;;  %s1103_s4 = inlined_call_operand.hbm [shape: f32[2,5,8,10], index: 4, kind: output, shape index: {}]  }
   0x1   :  { %10 = vsyncpa [#allocation5], 0 }
   0x2   :  { %11 = vsyncpa [#allocation4], 0  ;;  %s16_s17 = sshll.u32 %s1099_s0, 4  ;;  %s623_s18 = smov [#allocation2]   ;;  %s17_s17 = int_to_ptr.hbm [resolvable:$true] %s16_s17 }
   0x3   :  { %s18_s19 = sshll.u32 %s623_s18, 4  ;;  %s30_s22 = sshll.u32 %s1100_s1, 4  ;;  %s19_s19 = int_to_ptr.vmem [resolvable:$true] %s18_s19  ;;  %s31_s22 = int_to_ptr.hbm [resolvable:$true] %s30_s22 }
   0x4   :  { %s624_s23 = smov 128   ;;  %s625_s24 = smov 8  }
   0x5   :  { %24 = dma.hbm_to_vmem [thread:$0]  %s17_s17, 1280, %s19_s19, [#allocation3], %s624_s23, %s624_s23, %s625_s24  }
   0x6   :  { %s626_s25 = smov [#allocation6]  }
   0x7   :  { %33 = dma.hbm_to_smem %s31_s22, 16, %s626_s25, [#allocation5]  }
   0x8   :  { %617 = dma.done.wait [#allocation3], 1280  }
   0x9   :  { %618 = vsyncadd [#allocation3], 4294966016 }
   0xa   :  { %619 = dma.done.wait [#allocation5], 16  }
   0xb   :  { %620 = vsyncadd [#allocation5], 4294967280 }
   0xc   :  { %46 = sfence }
   0xd   :  { %s663_s0 = sld [smem:[#allocation6 + $0x14]]  ;;  %v671_v0 = vld [vmem:[#allocation2] sm:$0xff]  ;;  %v675_v1 = vld [vmem:[#allocation2 + $0x8] sm:$0xff]  ;;  %v677_v2 = vld [vmem:[#allocation2 + $0x10] sm:$0xff]  ;;  %vm199_vm0 = vcmask 80896  }
   0xe   :  { %s665_s26 = sld [smem:[#allocation6 + $0x15]]  ;;  %v682_v4 = vld [vmem:[#allocation2 + $0x18] sm:$0xff]  ;;  %v688_v7 = vld [vmem:[#allocation2 + $0x20] sm:$0xff]  ;;  %v713_v17 = vld [vmem:[#allocation2 + $0x28] sm:$0xff] }
   0xf   :  { %s667_s1 = sld [smem:[#allocation6 + $0x16]]  ;;  %v719_v21 = vld [vmem:[#allocation2 + $0x30] sm:$0xff]  ;;  %v726_v25 = vld [vmem:[#allocation2 + $0x38] sm:$0xff]  ;;  %v741_v35 = vld [vmem:[#allocation2 + $0x40] sm:$0xff] }
  0x10   :  { %s669_s27 = sld [smem:[#allocation6 + $0x17]]  ;;  %v767_v48 = vld [vmem:[#allocation2 + $0x48] sm:$0xff] }
  0x11   :  { %s673_s28 = sld [smem:[#allocation6 + $0x18]] }
  0x12   :  { %s512_s29 = sld [smem:[#allocation6 + $0xa]] }
  0x13   :  { %v172_v3 = vstv %s663_s0  ;;  %s680_s30 = sld [smem:[#allocation6 + $0xb]] }
  0x14   :  { %v173_v5 = vmul.f32 %v172_v3, %v671_v0  ;;  %v176_v6 = vstv %s665_s26  ;;  %s686_s5 = sld [smem:[#allocation6 + $0xc]]  ;;  %v730_v27 = vmul.f32 %v172_v3, %v713_v17 }
  0x15   :  { %v177_v8 = vmul.f32 %v176_v6, %v675_v1  ;;  %v182_v9 = vstv %s667_s1  ;;  %s694_s6 = sld [smem:[#allocation6 + $0xd]] }
  0x16   :  { %v183_v10 = vmul.f32 %v182_v9, %v677_v2  ;;  %v188_v11 = vstv %s669_s27  ;;  %s700_s7 = sld [smem:[#allocation6 + $0xe]] }
  0x17   :  { %v179_v12 = vadd.f32 %v177_v8, %v173_v5  ;;  %v189_v13 = vmul.f32 %v188_v11, %v682_v4  ;;  %v194_v14 = vstv %s673_s28  ;;  %s706_s8 = sld [smem:[#allocation6]] }
  0x18   :  { %v195_v15 = vmul.f32 %v194_v14, %v688_v7  ;;  %v116_v16 = vstv %s512_s29  ;;  %s711_s9 = sld [smem:[#allocation6 + $0x1]]  ;;  %s489_s29 = sshll.u32 %s1103_s4, 4  ;;  %s490_s29 = int_to_ptr.hbm [resolvable:$true] %s489_s29 }
  0x19   :  { %v185_v18 = vadd.f32 %v183_v10, %v179_v12  ;;  %v117_v19 = vmul.f32 %v116_v16, %v671_v0  ;;  %v120_v20 = vstv %s680_s30  ;;  %s717_s10 = sld [smem:[#allocation6 + $0x2]]  ;;  %v118_v22 = vmul.f32 %v116_v16, %v713_v17 }
  0x1a   :  { %v121_v23 = vmul.f32 %v120_v20, %v675_v1  ;;  %v126_v24 = vstv %s686_s5  ;;  %s724_s11 = sld [smem:[#allocation6 + $0x3]]  ;;  %v122_v26 = vmul.f32 %v120_v20, %v719_v21 }
  0x1b   :  { %v191_v28 = vadd.f32 %v189_v13, %v185_v18  ;;  %v127_v29 = vmul.f32 %v126_v24, %v677_v2  ;;  %v132_v30 = vstv %s694_s6  ;;  %s734_s12 = sld [smem:[#allocation6 + $0x4]]  ;;  %v737_v31 = vmul.f32 %v126_v24, %v726_v25 }
  0x1c   :  { %v123_v32 = vadd.f32 %v121_v23, %v117_v19  ;;  %v133_v33 = vmul.f32 %v132_v30, %v682_v4  ;;  %v138_v34 = vstv %s700_s7  ;;  %s743_s13 = sld [smem:[#allocation6 + $0xf]]  ;;  %v745_v36 = vadd.f32 %v122_v26, %v118_v22 }
  0x1d   :  { %v747_v37 = vadd.f32 %v195_v15, %v191_v28  ;;  %v139_v38 = vmul.f32 %v138_v34, %v688_v7  ;;  %v60_v39 = vstv %s706_s8  ;;  %s753_s14 = sld [smem:[#allocation6 + $0x10]]  ;;  %v756_v40 = vmul.f32 %v132_v30, %v741_v35 }
  0x1e   :  { %v129_v41 = vadd.f32 %v127_v29, %v123_v32  ;;  %v61_v42 = vmul.f32 %v60_v39, %v671_v0  ;;  %v64_v43 = vstv %s711_s9  ;;  %v62_v44 = vmul.f32 %v60_v39, %v713_v17  ;;  %s761_s15 = sld [smem:[#allocation6 + $0x11]] }
  0x1f   :  { %v212_v45 = vsel %vm199_vm0, %v747_v37, 0.0  ;;  %v65_v46 = vmul.f32 %v64_v43, %v675_v1  ;;  %v70_v47 = vstv %s717_s10  ;;  %v66_v49 = vmul.f32 %v64_v43, %v719_v21  ;;  %s770_s16 = sld [smem:[#allocation6 + $0x12]] }
  0x20   :  { %213 = vadd.xlane.f32.xlu2 %v212_v45  ;;  %v135_v50 = vadd.f32 %v133_v33, %v129_v41  ;;  %v71_v51 = vmul.f32 %v70_v47, %v677_v2  ;;  %v76_v52 = vstv %s724_s11  ;;  %v72_v53 = vmul.f32 %v70_v47, %v726_v25  ;;  %s775_s17 = sld [smem:[#allocation6 + $0x13]] }
  0x21   :  { %v67_v54 = vadd.f32 %v65_v46, %v61_v42  ;;  %v77_v55 = vmul.f32 %v76_v52, %v682_v4  ;;  %v82_v56 = vstv %s734_s12  ;;  %v68_v57 = vadd.f32 %v66_v49, %v62_v44  ;;  %s779_s18 = sld [smem:[#allocation6 + $0x5]] }
  0x22   :  { %v781_v58 = vadd.f32 %v139_v38, %v135_v50  ;;  %v83_v59 = vmul.f32 %v82_v56, %v688_v7  ;;  %v78_v60 = vmul.f32 %v76_v52, %v741_v35  ;;  %v84_v61 = vmul.f32 %v82_v56, %v767_v48  ;;  %s786_s19 = sld [smem:[#allocation6 + $0x6]] }
  0x23   :  { %v73_v62 = vadd.f32 %v71_v51, %v67_v54  ;;  %v74_v63 = vadd.f32 %v72_v53, %v68_v57  ;;  %v144_v3 = vstv %s743_s13  ;;  %v148_v5 = vstv %s753_s14  ;;  %s790_s20 = sld [smem:[#allocation6 + $0x7]] }
  0x24   :  { %v206_v8 = vsel %vm199_vm0, %v781_v58, 0.0  ;;  %v145_v10 = vmul.f32 %v144_v3, %v671_v0  ;;  %v149_v12 = vmul.f32 %v148_v5, %v675_v1  ;;  %v154_v13 = vstv %s761_s15  ;;  %s797_s21 = sld [smem:[#allocation6 + $0x8]] }
  0x25   :  { %207 = vadd.xlane.f32.xlu1 %v206_v8  ;;  %v79_v15 = vadd.f32 %v77_v55, %v73_v62  ;;  %v80_v16 = vadd.f32 %v78_v60, %v74_v63  ;;  %v155_v18 = vmul.f32 %v154_v13, %v677_v2  ;;  %v160_v19 = vstv %s770_s16  ;;  %s801_s22 = sld [smem:[#allocation6 + $0x9]] }
  0x26   :  { %v151_v20 = vadd.f32 %v149_v12, %v145_v10  ;;  %v161_v22 = vmul.f32 %v160_v19, %v682_v4  ;;  %v166_v23 = vstv %s775_s17  ;;  %v146_v24 = vmul.f32 %v144_v3, %v713_v17 }
  0x27   :  { %v806_v26 = vadd.f32 %v83_v59, %v79_v15  ;;  %v808_v28 = vadd.f32 %v84_v61, %v80_v16  ;;  %v167_v29 = vmul.f32 %v166_v23, %v688_v7  ;;  %v88_v30 = vstv %s779_s18 }
  0x28   :  { %v157_v32 = vadd.f32 %v155_v18, %v151_v20  ;;  %v89_v33 = vmul.f32 %v88_v30, %v671_v0  ;;  %v92_v38 = vstv %s786_s19  ;;  %v150_v39 = vmul.f32 %v148_v5, %v719_v21 }
  0x29   :  { %v200_v41 = vsel %vm199_vm0, %v806_v26, 0.0  ;;  %v215_v42 = vsel %vm199_vm0, %v808_v28, 0.0  ;;  %v93_v43 = vmul.f32 %v92_v38, %v675_v1  ;;  %v98_v44 = vstv %s790_s20 }
  0x2a   :  { %201 = vadd.xlane.f32.xlu0 %v200_v41  ;;  %216 = vadd.xlane.f32.xlu2 %v215_v42  ;;  %v163_v45 = vadd.f32 %v161_v22, %v157_v32  ;;  %v99_v46 = vmul.f32 %v98_v44, %v677_v2  ;;  %v104_v47 = vstv %s797_s21  ;;  %v152_v0 = vadd.f32 %v150_v39, %v146_v24 }
  0x2b   :  { %v95_v49 = vadd.f32 %v93_v43, %v89_v33  ;;  %v105_v50 = vmul.f32 %v104_v47, %v682_v4  ;;  %v110_v51 = vstv %s801_s22  ;;  %v156_v52 = vmul.f32 %v154_v13, %v726_v25 }
  0x2c   :  { %v826_v53 = vadd.f32 %v167_v29, %v163_v45  ;;  %v111_v54 = vmul.f32 %v110_v51, %v688_v7  ;;  %v162_v1 = vmul.f32 %v160_v19, %v741_v35  ;;  %v168_v55 = vmul.f32 %v166_v23, %v767_v48 }
  0x2d   :  { %v101_v56 = vadd.f32 %v99_v46, %v95_v49  ;;  %v158_v57 = vadd.f32 %v156_v52, %v152_v0  ;;  %v130_v2 = vadd.f32 %v737_v31, %v745_v36  ;;  %v140_v4 = vmul.f32 %v138_v34, %v767_v48 }
  0x2e   :  { %v209_v59 = vsel %vm199_vm0, %v826_v53, 0.0  ;;  %v90_v60 = vmul.f32 %v88_v30, %v713_v17  ;;  %v94_v7 = vmul.f32 %v92_v38, %v719_v21  ;;  %v100_v61 = vmul.f32 %v98_v44, %v726_v25 }
  0x2f   :  { %210 = vadd.xlane.f32.xlu1 %v209_v59  ;;  %v107_v62 = vadd.f32 %v105_v50, %v101_v56  ;;  %v164_v63 = vadd.f32 %v162_v1, %v158_v57  ;;  %v136_v3 = vadd.f32 %v756_v40, %v130_v2  ;;  %v106_v31 = vmul.f32 %v104_v47, %v741_v35 }
  0x30   :  { %v96_v5 = vadd.f32 %v94_v7, %v90_v60  ;;  %v178_v34 = vmul.f32 %v176_v6, %v719_v21  ;;  %v184_v10 = vmul.f32 %v182_v9, %v726_v25  ;;  %v112_v13 = vmul.f32 %v110_v51, %v767_v48 }
  0x31   :  { %v846_v36 = vadd.f32 %v111_v54, %v107_v62  ;;  %v848_v8 = vadd.f32 %v168_v55, %v164_v63  ;;  %v850_v17 = vadd.f32 %v140_v4, %v136_v3  ;;  %v247_v19 = vmul.f32 %v806_v26, %v806_v26 }
  0x32   :  { %v102_v12 = vadd.f32 %v100_v61, %v96_v5  ;;  %v180_v40 = vadd.f32 %v178_v34, %v730_v27  ;;  %v190_v27 = vmul.f32 %v188_v11, %v741_v35  ;;  %v196_v24 = vmul.f32 %v194_v14, %v767_v48 }
  0x33   :  { %v203_v15 = vsel %vm199_vm0, %v846_v36, 0.0  ;;  %v224_v6 = vsel %vm199_vm0, %v848_v8, 0.0  ;;  %v221_v21 = vsel %vm199_vm0, %v850_v17, 0.0  ;;  %v248_v9 = vmul.f32 %v846_v36, %v846_v36 }
  0x34   :  { %204 = vadd.xlane.f32.xlu0 %v203_v15  ;;  %225 = vadd.xlane.f32.xlu2 %v224_v6  ;;  %v108_v16 = vadd.f32 %v106_v31, %v102_v12  ;;  %v186_v25 = vadd.f32 %v184_v10, %v180_v40  ;;  %v257_v29 = vsel %vm199_vm0, %v247_v19, 0.0  ;;  %v251_v35 = vmul.f32 %v747_v37, %v747_v37 }
  0x35   :  { %v260_v22 = vsel %vm199_vm0, %v248_v9, 0.0  ;;  %v250_v30 = vmul.f32 %v826_v53, %v826_v53  ;;  %v249_v48 = vmul.f32 %v781_v58, %v781_v58  ;;  %v254_v38 = vmul.f32 %v850_v17, %v850_v17 }
  0x36   :  { %v868_v18 = vadd.f32 %v112_v13, %v108_v16  ;;  %v192_v23 = vadd.f32 %v190_v27, %v186_v25  ;;  %v269_v33 = vsel %vm199_vm0, %v251_v35, 0.0  ;;  %v252_v44 = vmul.f32 %v808_v28, %v808_v28 }
  0x37   :  { %222 = vadd.xlane.f32.xlu1 %v221_v21  ;;  %v266_v14 = vsel %vm199_vm0, %v250_v30, 0.0  ;;  %v263_v41 = vsel %vm199_vm0, %v249_v48, 0.0  ;;  %v278_v42 = vsel %vm199_vm0, %v254_v38, 0.0  ;;  %v255_v0 = vmul.f32 %v848_v8, %v848_v8 }
  0x38   :  { %v218_v20 = vsel %vm199_vm0, %v868_v18, 0.0  ;;  %v879_v11 = vadd.f32 %v196_v24, %v192_v23  ;;  %v253_v39 = vmul.f32 %v868_v18, %v868_v18  ;;  %v272_v46 = vsel %vm199_vm0, %v252_v44, 0.0 }
  0x39   :  { %v281_v49 = vsel %vm199_vm0, %v255_v0, 0.0  ;;  %v627_v50 = vmov 10.0  }
  0x3a   :  { %v227_v32 = vsel %vm199_vm0, %v879_v11, 0.0  ;;  %v275_v43 = vsel %vm199_vm0, %v253_v39, 0.0  ;;  %v256_v45 = vmul.f32 %v879_v11, %v879_v11  ;;  %535 = vrcp.f32 %v627_v50 }
  0x3c   :  { %219 = vadd.xlane.f32.xlu0 %v218_v20  ;;  %261 = vadd.xlane.f32.xlu2 %v260_v22  ;;  %v284_v47 = vsel %vm199_vm0, %v256_v45, 0.0 }
  0x3f   :  { %258 = vadd.xlane.f32.xlu1 %v257_v29 }
  0x40   :  { %v536_v52 = vpop.eup %535 }
  0x41   :  { %v231_v1 = vmul.f32 10.0, %v536_v52  ;;  %vm235_vm1 = vweird.f32 %v536_v52 }
  0x43   :  { %v232_v57 = vsub.f32 1.0, %v231_v1 }
  0x44   :  { %228 = vadd.xlane.f32.xlu0 %v227_v32  ;;  %270 = vadd.xlane.f32.xlu2 %v269_v33 }
  0x45   :  { %v233_v4 = vmul.f32 %v536_v52, %v232_v57 }
  0x47   :  { %267 = vadd.xlane.f32.xlu1 %v266_v14  ;;  %v234_v59 = vadd.f32 %v536_v52, %v233_v4 }
  0x49   :  { %v907_v62 = vsel %vm235_vm1, %v536_v52, %v234_v59 }
  0x4c   :  { %264 = vadd.xlane.f32.xlu0 %v263_v41  ;;  %279 = vadd.xlane.f32.xlu2 %v278_v42 }
  0x4f   :  { %276 = vadd.xlane.f32.xlu1 %v275_v43 }
  0x54   :  { %273 = vadd.xlane.f32.xlu0 %v272_v46 }
  0x57   :  { %285 = vadd.xlane.f32.xlu1 %v284_v47 }
  0x5c   :  { %282 = vadd.xlane.f32.xlu0 %v281_v49 }
  0x93   :  { %v214_v51 = vpop.xlane.xlu2 %213 }
  0x94   :  { %v922_v6 = vmul.f32 %v907_v62, %v214_v51 }
  0x96   :  { %v301_v20 = vmul.f32 %v922_v6, %v922_v6  ;;  %v431_v41 = vsub.f32 %v747_v37, %v922_v6 }
  0x98   :  { %v208_v54 = vpop.xlane.xlu1 %207 }
  0x99   :  { %v934_v23 = vmul.f32 %v907_v62, %v208_v54 }
  0x9b   :  { %v299_v42 = vmul.f32 %v934_v23, %v934_v23  ;;  %v429_v43 = vsub.f32 %v781_v58, %v934_v23 }
  0x9d   :  { %v202_v55 = vpop.xlane.xlu0 %201  ;;  %v217_v56 = vpop.xlane.xlu2 %216 }
  0x9e   :  { %v913_v3 = vmul.f32 %v907_v62, %v202_v55  ;;  %v945_v48 = vmul.f32 %v907_v62, %v217_v56 }
  0xa0   :  { %v297_v40 = vmul.f32 %v913_v3, %v913_v3  ;;  %v427_v45 = vsub.f32 %v806_v26, %v913_v3  ;;  %v968_v26 = vmul.f32 %v945_v48, %v945_v48 }
  0xa2   :  { %v211_v2 = vpop.xlane.xlu1 %210 }
  0xa3   :  { %v925_v9 = vmul.f32 %v907_v62, %v211_v2 }
  0xa5   :  { %v300_v35 = vmul.f32 %v925_v9, %v925_v9  ;;  %v430_v55 = vsub.f32 %v826_v53, %v925_v9 }
  0xa7   :  { %v205_v60 = vpop.xlane.xlu0 %204  ;;  %v226_v7 = vpop.xlane.xlu2 %225 }
  0xa8   :  { %v910_v63 = vmul.f32 %v907_v62, %v205_v60  ;;  %v974_v57 = vmul.f32 %v907_v62, %v226_v7 }
  0xaa   :  { %v223_v61 = vpop.xlane.xlu1 %222  ;;  %v298_v34 = vmul.f32 %v910_v63, %v910_v63 }
  0xab   :  { %v940_v33 = vmul.f32 %v907_v62, %v223_v61 }
  0xad   :  { %v304_v51 = vmul.f32 %v940_v33, %v940_v33 }
  0xaf   :  { %v220_v5 = vpop.xlane.xlu0 %219  ;;  %v262_v31 = vpop.xlane.xlu2 %261 }
  0xb0   :  { %v288_v10 = vmul.f32 %v262_v31, %v907_v62  ;;  %v957_v46 = vmul.f32 %v907_v62, %v220_v5 }
  0xb2   :  { %v308_v12 = vsub.f32 %v288_v10, %v298_v34  ;;  %v259_v13 = vpop.xlane.xlu1 %258  ;;  %v303_v61 = vmul.f32 %v957_v46, %v957_v46  ;;  %v428_v34 = vsub.f32 %v846_v36, %v910_v63 }
  0xb3   :  { %v287_v15 = vmul.f32 %v259_v13, %v907_v62 }
  0xb4   :  { %v318_v21 = vadd.f32 1e-05, %v308_v12 }
  0xb5   :  { %v307_v16 = vsub.f32 %v287_v15, %v297_v40 }
  0xb6   :  { %537 = vrsqrt.f32 %v318_v21  ;;  %vm343_vm3 = vweird.f32 %v318_v21 }
  0xb7   :  { %v927_v25 = vadd.f32 1e-05, %v307_v16  ;;  %v229_v27 = vpop.xlane.xlu0 %228  ;;  %v271_v19 = vpop.xlane.xlu2 %270  ;;  %v989_v16 = vld [vmem:[%s1101_s2] ss:$0 sm:$0xff]  ;;  %s628_s2 = smov [#allocation7]  }
  0xb8   :  { %v291_v22 = vmul.f32 %v271_v19, %v907_v62  ;;  %v992_v36 = vmul.f32 %v907_v62, %v229_v27 }
  0xb9   :  { %539 = vrsqrt.f32 %v927_v25  ;;  %vm333_vm6 = vweird.f32 %v927_v25 }
  0xba   :  { %v311_v24 = vsub.f32 %v291_v22, %v301_v20  ;;  %v268_v29 = vpop.xlane.xlu1 %267 }
  0xbb   :  { %v290_v30 = vmul.f32 %v268_v29, %v907_v62  ;;  %v1001_v29 = vld [vmem:[%s1102_s3] ss:$0 sm:$0xff]  ;;  %s487_s3 = sshll.u32 %s628_s2, 4  ;;  %s488_s3 = int_to_ptr.vmem [resolvable:$true] %s487_s3 }
  0xbc   :  { %v538_v32 = vpop.eup %537  ;;  %v942_v14 = vadd.f32 1e-05, %v311_v24 }
  0xbd   :  { %v338_v38 = vmul.f32 %v538_v32, %v318_v21  ;;  %v310_v39 = vsub.f32 %v290_v30, %v300_v35  ;;  %vm344_vm2 = vweird.f32 %v538_v32 }
  0xbe   :  { %541 = vrsqrt.f32 %v942_v14  ;;  %vm345_vm4 = vmor %vm343_vm3, %vm344_vm2  ;;  %vm373_vm9 = vweird.f32 %v942_v14 }
  0xbf   :  { %v540_v44 = vpop.eup %539  ;;  %v339_v47 = vmul.f32 %v538_v32, %v338_v38  ;;  %v959_v0 = vadd.f32 1e-05, %v310_v39  ;;  %v265_v49 = vpop.xlane.xlu0 %264 }
  0xc0   :  { %v280_v50 = vpop.xlane.xlu2 %279  ;;  %v328_v52 = vmul.f32 %v540_v44, %v927_v25  ;;  %v289_v54 = vmul.f32 %v265_v49, %v907_v62  ;;  %vm334_vm5 = vweird.f32 %v540_v44 }
  0xc1   :  { %v294_v1 = vmul.f32 %v280_v50, %v907_v62  ;;  %v340_v56 = vmul.f32 0.5, %v339_v47  ;;  %543 = vrsqrt.f32 %v959_v0  ;;  %vm335_vm7 = vmor %vm333_vm6, %vm334_vm5  ;;  %vm363_vm10 = vweird.f32 %v959_v0 }
  0xc2   :  { %v329_v2 = vmul.f32 %v540_v44, %v328_v52  ;;  %v309_v4 = vsub.f32 %v289_v54, %v299_v42  ;;  %v277_v60 = vpop.xlane.xlu1 %276 }
  0xc3   :  { %v314_v59 = vsub.f32 %v294_v1, %v304_v51  ;;  %v341_v3 = vsub.f32 1.5, %v340_v56  ;;  %v293_v5 = vmul.f32 %v277_v60, %v907_v62 }
  0xc4   :  { %v542_v31 = vpop.eup %541  ;;  %v330_v10 = vmul.f32 0.5, %v329_v2  ;;  %v981_v12 = vadd.f32 1e-05, %v309_v4  ;;  %v306_v2 = vmul.f32 %v992_v36, %v992_v36 }
  0xc5   :  { %v983_v7 = vadd.f32 1e-05, %v314_v59  ;;  %v342_v13 = vmul.f32 %v538_v32, %v341_v3  ;;  %v368_v40 = vmul.f32 %v542_v31, %v942_v14  ;;  %v313_v15 = vsub.f32 %v293_v5, %v303_v61 }
  0xc6   :  { %v331_v19 = vsub.f32 1.5, %v330_v10  ;;  %545 = vrsqrt.f32 %v981_v12  ;;  %vm374_vm8 = vweird.f32 %v542_v31  ;;  %vm353_vm14 = vweird.f32 %v981_v12 }
  0xc7   :  { %v544_v63 = vpop.eup %543  ;;  %v346_v20 = vsel %vm345_vm4, %v538_v32, %v342_v13  ;;  %v369_v22 = vmul.f32 %v542_v31, %v368_v40  ;;  %547 = vrsqrt.f32 %v983_v7  ;;  %v996_v21 = vadd.f32 1e-05, %v313_v15  ;;  %v274_v24 = vpop.xlane.xlu0 %273  ;;  %vm375_vm11 = vmor %vm373_vm9, %vm374_vm8 }
  0xc8   :  { %v438_v35 = vmul.f32 %v428_v34, %v346_v20  ;;  %v332_v30 = vmul.f32 %v540_v44, %v331_v19  ;;  %v358_v27 = vmul.f32 %v544_v63, %v959_v0  ;;  %v1007_v32 = vmul.f32 %v974_v57, %v974_v57 }
  0xc9   :  { %v370_v38 = vmul.f32 0.5, %v369_v22  ;;  %549 = vrsqrt.f32 %v996_v21  ;;  %v292_v39 = vmul.f32 %v274_v24, %v907_v62  ;;  %vm364_vm12 = vweird.f32 %v544_v63 }
  0xca   :  { %v451_v42 = vmul.f32 %v989_v16, %v438_v35  ;;  %v336_v47 = vsel %vm335_vm7, %v540_v44, %v332_v30  ;;  %v359_v49 = vmul.f32 %v544_v63, %v358_v27  ;;  %v286_v50 = vpop.xlane.xlu1 %285  ;;  %vm365_vm13 = vmor %vm363_vm10, %vm364_vm12  ;;  %vm403_vm2 = vweird.f32 %v983_v7 }
  0xcb   :  { %v437_v25 = vmul.f32 %v427_v45, %v336_v47  ;;  %v371_v51 = vsub.f32 1.5, %v370_v38  ;;  %v312_v52 = vsub.f32 %v292_v39, %v968_v26  ;;  %v296_v54 = vmul.f32 %v286_v50, %v907_v62 }
  0xcc   :  { %v546_v1 = vpop.eup %545  ;;  %v464_v56 = vadd.f32 %v1001_v29, %v451_v42  ;;  %v360_v4 = vmul.f32 0.5, %v359_v49  ;;  %vm393_vm6 = vweird.f32 %v996_v21 }
  0xcd   :  { %v548_v59 = vpop.eup %547  ;;  %v450_v44 = vmul.f32 %v989_v16, %v437_v25  ;;  %v372_v60 = vmul.f32 %v542_v31, %v371_v51  ;;  %v348_v45 = vmul.f32 %v546_v1, %v981_v12  ;;  %v1025_v3 = vadd.f32 1e-05, %v312_v52 }
  0xce   :  { %474 = vst.msk [vmem:[#allocation7 + $0x8] sm:$0xff] %vm199_vm0, %v464_v56  ;;  %v361_v26 = vsub.f32 1.5, %v360_v4  ;;  %v398_v61 = vmul.f32 %v548_v59, %v983_v7  ;;  %v316_v13 = vsub.f32 %v296_v54, %v306_v2  ;;  %vm354_vm15 = vweird.f32 %v546_v1 }
  0xcf   :  { %v550_v14 = vpop.eup %549  ;;  %v463_v5 = vadd.f32 %v1001_v29, %v450_v44  ;;  %v376_v34 = vsel %vm375_vm11, %v542_v31, %v372_v60  ;;  %v349_v10 = vmul.f32 %v546_v1, %v348_v45  ;;  %v283_v22 = vpop.xlane.xlu0 %282  ;;  %551 = vrsqrt.f32 %v1025_v3  ;;  %vm355_vm3 = vmor %vm353_vm14, %vm354_vm15 }
  0xd0   :  { %v441_v40 = vmul.f32 %v431_v41, %v376_v34  ;;  %v362_v15 = vmul.f32 %v544_v63, %v361_v26  ;;  %v399_v19 = vmul.f32 %v548_v59, %v398_v61  ;;  %v388_v20 = vmul.f32 %v550_v14, %v996_v21 }
  0xd1   :  { %473 = vst.msk [vmem:[#allocation7] sm:$0xff] %vm199_vm0, %v463_v5  ;;  %v350_v24 = vmul.f32 0.5, %v349_v10  ;;  %v1041_v27 = vadd.f32 1e-05, %v316_v13  ;;  %v295_v0 = vmul.f32 %v283_v22, %v907_v62  ;;  %vm404_vm1 = vweird.f32 %v548_v59 }
  0xd2   :  { %v454_v31 = vmul.f32 %v989_v16, %v441_v40  ;;  %v366_v37 = vsel %vm365_vm13, %v544_v63, %v362_v15  ;;  %v400_v6 = vmul.f32 0.5, %v399_v19  ;;  %v389_v41 = vmul.f32 %v550_v14, %v388_v20  ;;  %vm405_vm5 = vmor %vm403_vm2, %vm404_vm1 }
  0xd3   :  { %v440_v35 = vmul.f32 %v430_v55, %v366_v37  ;;  %v351_v30 = vsub.f32 1.5, %v350_v24  ;;  %553 = vrsqrt.f32 %v1041_v27  ;;  %vm394_vm4 = vweird.f32 %v550_v14 }
  0xd4   :  { %v467_v38 = vadd.f32 %v1001_v29, %v454_v31  ;;  %v401_v39 = vsub.f32 1.5, %v400_v6  ;;  %v390_v42 = vmul.f32 0.5, %v389_v41  ;;  %v315_v9 = vsub.f32 %v295_v0, %v1007_v32  ;;  %vm395_vm7 = vmor %vm393_vm6, %vm394_vm4 }
  0xd5   :  { %v453_v47 = vmul.f32 %v989_v16, %v440_v35  ;;  %v352_v49 = vmul.f32 %v546_v1, %v351_v30  ;;  %v552_v55 = vpop.eup %551  ;;  %v434_v63 = vsub.f32 %v850_v17, %v940_v33  ;;  %v433_v32 = vsub.f32 %v868_v18, %v957_v46 }
  0xd6   :  { %477 = vst.msk [vmem:[#allocation7 + $0x20] sm:$0xff] %vm199_vm0, %v467_v38  ;;  %v402_v53 = vmul.f32 %v548_v59, %v401_v39  ;;  %v391_v62 = vsub.f32 1.5, %v390_v42  ;;  %v378_v52 = vmul.f32 %v552_v55, %v1025_v3  ;;  %v325_v33 = vadd.f32 1e-05, %v315_v9 }
  0xd7   :  { %v466_v50 = vadd.f32 %v1001_v29, %v453_v47  ;;  %v356_v7 = vsel %vm355_vm3, %v546_v1, %v352_v49  ;;  %vm384_vm8 = vweird.f32 %v552_v55  ;;  %vm383_vm9 = vweird.f32 %v1025_v3 }
  0xd8   :  { %v439_v12 = vmul.f32 %v429_v43, %v356_v7  ;;  %v406_v25 = vsel %vm405_vm5, %v548_v59, %v402_v53  ;;  %v392_v51 = vmul.f32 %v550_v14, %v391_v62  ;;  %v379_v1 = vmul.f32 %v552_v55, %v378_v52  ;;  %vm385_vm10 = vmor %vm383_vm9, %vm384_vm8 }
  0xd9   :  { %476 = vst.msk [vmem:[#allocation7 + $0x18] sm:$0xff] %vm199_vm0, %v466_v50  ;;  %v444_v17 = vmul.f32 %v434_v63, %v406_v25  ;;  %v554_v56 = vpop.eup %553  ;;  %555 = vrsqrt.f32 %v325_v33  ;;  %vm423_vm12 = vweird.f32 %v1041_v27  ;;  %v436_v3 = vsub.f32 %v879_v11, %v992_v36 }
  0xda   :  { %v452_v54 = vmul.f32 %v989_v16, %v439_v12  ;;  %v396_v21 = vsel %vm395_vm7, %v550_v14, %v392_v51  ;;  %v380_v2 = vmul.f32 0.5, %v379_v1  ;;  %v418_v18 = vmul.f32 %v554_v56, %v1041_v27 }
  0xdb   :  { %v457_v58 = vmul.f32 %v989_v16, %v444_v17  ;;  %v443_v23 = vmul.f32 %v433_v32, %v396_v21  ;;  %v432_v14 = vsub.f32 %v808_v28, %v945_v48  ;;  %vm424_vm11 = vweird.f32 %v554_v56 }
  0xdc   :  { %v465_v43 = vadd.f32 %v1001_v29, %v452_v54  ;;  %v381_v59 = vsub.f32 1.5, %v380_v2  ;;  %v419_v44 = vmul.f32 %v554_v56, %v418_v18  ;;  %vm425_vm13 = vmor %vm423_vm12, %vm424_vm11  ;;  %vm413_vm15 = vweird.f32 %v325_v33 }
  0xdd   :  { %v470_v46 = vadd.f32 %v1001_v29, %v457_v58  ;;  %v456_v4 = vmul.f32 %v989_v16, %v443_v23  ;;  %v435_v6 = vsub.f32 %v848_v8, %v974_v57 }
  0xde   :  { %475 = vst.msk [vmem:[#allocation7 + $0x10] sm:$0xff] %vm199_vm0, %v465_v43  ;;  %v382_v45 = vmul.f32 %v552_v55, %v381_v59  ;;  %v420_v26 = vmul.f32 0.5, %v419_v44 }
  0xdf   :  { %480 = vst.msk [vmem:[#allocation7 + $0x38] sm:$0xff] %vm199_vm0, %v470_v46  ;;  %v469_v60 = vadd.f32 %v1001_v29, %v456_v4  ;;  %v556_v61 = vpop.eup %555 }
  0xe0   :  { %v386_v5 = vsel %vm385_vm10, %v552_v55, %v382_v45  ;;  %v421_v34 = vsub.f32 1.5, %v420_v26  ;;  %v408_v10 = vmul.f32 %v556_v61, %v325_v33  ;;  %vm414_vm14 = vweird.f32 %v556_v61 }
  0xe1   :  { %479 = vst.msk [vmem:[#allocation7 + $0x30] sm:$0xff] %vm199_vm0, %v469_v60  ;;  %v442_v13 = vmul.f32 %v432_v14, %v386_v5  ;;  %vm415_vm1 = vmor %vm413_vm15, %vm414_vm14 }
  0xe2   :  { %v422_v40 = vmul.f32 %v554_v56, %v421_v34  ;;  %v409_v15 = vmul.f32 %v556_v61, %v408_v10 }
  0xe3   :  { %v455_v19 = vmul.f32 %v989_v16, %v442_v13 }
  0xe4   :  { %v426_v20 = vsel %vm425_vm13, %v554_v56, %v422_v40  ;;  %v410_v28 = vmul.f32 0.5, %v409_v15 }
  0xe5   :  { %v468_v48 = vadd.f32 %v1001_v29, %v455_v19  ;;  %v446_v22 = vmul.f32 %v436_v3, %v426_v20 }
  0xe6   :  { %v411_v24 = vsub.f32 1.5, %v410_v28 }
  0xe7   :  { %478 = vst.msk [vmem:[#allocation7 + $0x28] sm:$0xff] %vm199_vm0, %v468_v48  ;;  %v459_v31 = vmul.f32 %v989_v16, %v446_v22 }
  0xe8   :  { %v412_v37 = vmul.f32 %v556_v61, %v411_v24 }
  0xe9   :  { %v472_v11 = vadd.f32 %v1001_v29, %v459_v31 }
  0xea   :  { %v416_v36 = vsel %vm415_vm1, %v556_v61, %v412_v37 }
  0xeb   :  { %482 = vst.msk [vmem:[#allocation7 + $0x48] sm:$0xff] %vm199_vm0, %v472_v11  ;;  %v445_v41 = vmul.f32 %v435_v6, %v416_v36 }
  0xed   :  { %v458_v35 = vmul.f32 %v989_v16, %v445_v41 }
  0xef   :  { %v471_v30 = vadd.f32 %v1001_v29, %v458_v35 }
  0xf1   :  { %481 = vst.msk [vmem:[#allocation7 + $0x40] sm:$0xff] %vm199_vm0, %v471_v30 }
  0xf2   :  { %495 = dma.vmem_to_hbm [thread:$0]  %s488_s3, 1280, %s490_s29, [#allocation4], %s624_s23, %s624_s23, %s625_s24  }
  0xf3   :  { %621 = dma.done.wait [#allocation4], 1280  }
  0xf4   :  { %622 = vsyncadd [#allocation4], 4294966016 }
  0xf5   :  { %500 = vsyncpa [#allocation3], 1 }
  0xf6   :  { %501 = vsyncpa [#allocation4], 1 }
  0xf7   :  { %502 = vsyncpa [#allocation5], 1 }

</bundles_post_ra>
